<compile_context>
chip_gen: v6e
topology: v6e:2x2x1
jax: 0.10.0
libtpu: 0.0.40
codegen_flags: <defaults>
</compile_context>

<pallas_src>
import jax
import jax.numpy as jnp
from jax.experimental import pallas as pl
from jax.experimental.pallas import tpu as pltpu

LANE = 128


def _make_outconv_kernel(c_in: int, c_out: int):
    """Build a kernel specialized for static (tiny) channel counts."""

    def kernel(w_ref, b_ref, x_ref, o_ref):
        # w_ref: (C_out, C_in) f32 in SMEM, b_ref: (C_out,) f32 in SMEM
        # x_ref: (C_in, TS, 128) in VMEM,   o_ref: (C_out, TS, 128) in VMEM
        # Load each input channel once as a full-vreg (TS, 128) slab.
        xs = [x_ref[ci].astype(jnp.float32) for ci in range(c_in)]
        for co in range(c_out):
            acc = w_ref[co, 0] * xs[0]          # scalar(SMEM) * full-vreg slab
            for ci in range(1, c_in):
                acc = acc + w_ref[co, ci] * xs[ci]
            o_ref[co] = (acc + b_ref[co]).astype(o_ref.dtype)

    return kernel


def out_conv(x, weight, bias, *, vmem_block_bytes=2 << 20):
    """1x1 Conv2d (stride 1, no padding) == per-pixel channel mix + bias.

    x:      (N, C_in, H, W)   NCHW like PyTorch
    weight: (C_out, C_in, 1, 1)
    bias:   (C_out,)
    returns (N, C_out, H, W)
    """
    N, C_in, H, W = x.shape
    C_out = weight.shape[0]
    HW = H * W

    # ---- lane-major 2D spatial layout: HW -> (rows, 128) -------------------
    rows = pl.cdiv(HW, LANE)
    padded = rows * LANE
    x3 = x.reshape(N, C_in, HW)                 # pure view, no transpose
    if padded != HW:
        # Only taken when H*W is not a multiple of 128 (costs one pad pass).
        x3 = jnp.pad(x3, ((0, 0), (0, 0), (0, padded - HW)))
    x4 = x3.reshape(N, C_in, rows, LANE)

    # ---- spatial tile: ~2 MiB of input per grid step, multiple of 8 rows ---
    itemsize = jnp.dtype(x.dtype).itemsize
    ts = max(8, vmem_block_bytes // (C_in * LANE * itemsize))
    ts = (ts // 8) * 8
    if N == 1 and rows > 8:
        # keep >= 2 parallel grid steps so v7x's 2nd TensorCore has work
        ts = min(ts, ((pl.cdiv(rows, 2) + 7) // 8) * 8)
    if ts >= rows:
        ts = rows           # single full-extent block (any size is legal)
    # else: ts is a multiple of 8 < rows, satisfying the (8,128) tiling rule;
    # the partial trailing block is masked and the compute is per-element.

    grid = (N, pl.cdiv(rows, ts))

    w2 = weight.reshape(C_out, C_in).astype(jnp.float32)   # tiny -> SMEM
    b1 = bias.reshape(C_out).astype(jnp.float32)

    # TODO(synk): for large C_in*C_out (>~16x16) switch to an MXU path
    # (pixels-major (ts*128, C_in) @ (C_in, C_out)); for tiny channel counts
    # the VPU path below is memory-bound and the MXU would be <1% utilized.
    kernel = _make_outconv_kernel(C_in, C_out)

    out = pl.pallas_call(
        kernel,
        out_shape=jax.ShapeDtypeStruct((N, C_out, rows, LANE), x.dtype),
        grid=grid,
        in_specs=[
            pl.BlockSpec(memory_space=pltpu.MemorySpace.SMEM),   # weight
            pl.BlockSpec(memory_space=pltpu.MemorySpace.SMEM),   # bias
            pl.BlockSpec((None, C_in, ts, LANE), lambda n, j: (n, 0, j, 0)),
        ],
        out_specs=pl.BlockSpec((None, C_out, ts, LANE), lambda n, j: (n, 0, j, 0)),
        compiler_params=pltpu.CompilerParams(
            dimension_semantics=("parallel", "parallel")),
    )(w2, b1, x4)

    out = out.reshape(N, C_out, padded)[:, :, :HW]
    return out.reshape(N, C_out, H, W)


if __name__ == "__main__":
    key = jax.random.PRNGKey(0)
    k_x, k_w, k_b = jax.random.split(key, 3)

    # OutConv(in_channels=4, class_num=3)
    N, C_in, H, W = 2, 4, 16, 16
    C_out = 3

    x = jax.random.normal(k_x, (N, C_in, H, W), dtype=jnp.float32)
    # deterministic synthetic params (PyTorch-like uniform fan-in scaling)
    bound = 1.0 / (C_in ** 0.5)
    weight = jax.random.uniform(k_w, (C_out, C_in, 1, 1),
                                minval=-bound, maxval=bound, dtype=jnp.float32)
    bias = jax.random.uniform(k_b, (C_out,),
                              minval=-bound, maxval=bound, dtype=jnp.float32)

    y = out_conv(x, weight, bias)
    y = jax.block_until_ready(y)

    # pure-JAX reference: conv2d 1x1 == einsum over channels + bias
    y_ref = jnp.einsum("nchw,oc->nohw", x, weight.reshape(C_out, C_in)) \
        + bias.reshape(1, C_out, 1, 1)

    assert y.shape == (N, C_out, H, W), y.shape
    assert jnp.allclose(y, y_ref, atol=1e-5, rtol=1e-5), \
        float(jnp.max(jnp.abs(y - y_ref)))
    print("KERNEL_OK")
</pallas_src>

<mosaic_0001>
module attributes {stable_mosaic.version = 11 : i64} {
  func.func @kernel(%arg0: i32, %arg1: i32, %arg2: memref<3x4xf32, #tpu.memory_space<smem>>, %arg3: memref<3xf32, #tpu.memory_space<smem>>, %arg4: memref<1x4x2x128xf32, #tpu.memory_space<vmem>>, %arg5: memref<1x3x2x128xf32, #tpu.memory_space<vmem>>) attributes {dimension_semantics = [#tpu.dimension_semantics<parallel>, #tpu.dimension_semantics<parallel>], iteration_bounds = array<i64: 2, 1>, scalar_prefetch = 0 : i64, scratch_operands = 0 : i64, tpu.core_type = #tpu.core_type<tc>, window_params = [{transform_indices = @transform_0, window_bounds = array<i64: 3, 4>}, {transform_indices = @transform_1, window_bounds = array<i64: 3>}, {transform_indices = @transform_2, window_bounds = array<i64: 1, 4, 2, 128>}, {transform_indices = @transform_3, window_bounds = array<i64: 1, 3, 2, 128>}]} {
    %c0 = arith.constant 0 : index
    %c0_0 = arith.constant 0 : index
    %c0_1 = arith.constant 0 : index
    %c0_2 = arith.constant 0 : index
    %0 = vector.load %arg4[%c0, %c0_0, %c0_1, %c0_2] : memref<1x4x2x128xf32, #tpu.memory_space<vmem>>, vector<1x1x2x128xf32>
    %1 = vector.shape_cast %0 : vector<1x1x2x128xf32> to vector<2x128xf32>
    %c0_3 = arith.constant 0 : index
    %c1 = arith.constant 1 : index
    %c0_4 = arith.constant 0 : index
    %c0_5 = arith.constant 0 : index
    %2 = vector.load %arg4[%c0_3, %c1, %c0_4, %c0_5] : memref<1x4x2x128xf32, #tpu.memory_space<vmem>>, vector<1x1x2x128xf32>
    %3 = vector.shape_cast %2 : vector<1x1x2x128xf32> to vector<2x128xf32>
    %c0_6 = arith.constant 0 : index
    %c2 = arith.constant 2 : index
    %c0_7 = arith.constant 0 : index
    %c0_8 = arith.constant 0 : index
    %4 = vector.load %arg4[%c0_6, %c2, %c0_7, %c0_8] : memref<1x4x2x128xf32, #tpu.memory_space<vmem>>, vector<1x1x2x128xf32>
    %5 = vector.shape_cast %4 : vector<1x1x2x128xf32> to vector<2x128xf32>
    %c0_9 = arith.constant 0 : index
    %c3 = arith.constant 3 : index
    %c0_10 = arith.constant 0 : index
    %c0_11 = arith.constant 0 : index
    %6 = vector.load %arg4[%c0_9, %c3, %c0_10, %c0_11] : memref<1x4x2x128xf32, #tpu.memory_space<vmem>>, vector<1x1x2x128xf32>
    %7 = vector.shape_cast %6 : vector<1x1x2x128xf32> to vector<2x128xf32>
    %c0_12 = arith.constant 0 : index
    %c0_13 = arith.constant 0 : index
    %8 = memref.load %arg2[%c0_12, %c0_13] : memref<3x4xf32, #tpu.memory_space<smem>>
    %9 = vector.broadcast %8 : f32 to vector<2x128xf32>
    %10 = arith.mulf %9, %1 : vector<2x128xf32>
    %c0_14 = arith.constant 0 : index
    %c1_15 = arith.constant 1 : index
    %11 = memref.load %arg2[%c0_14, %c1_15] : memref<3x4xf32, #tpu.memory_space<smem>>
    %12 = vector.broadcast %11 : f32 to vector<2x128xf32>
    %13 = arith.mulf %12, %3 : vector<2x128xf32>
    %14 = arith.addf %10, %13 : vector<2x128xf32>
    %c0_16 = arith.constant 0 : index
    %c2_17 = arith.constant 2 : index
    %15 = memref.load %arg2[%c0_16, %c2_17] : memref<3x4xf32, #tpu.memory_space<smem>>
    %16 = vector.broadcast %15 : f32 to vector<2x128xf32>
    %17 = arith.mulf %16, %5 : vector<2x128xf32>
    %18 = arith.addf %14, %17 : vector<2x128xf32>
    %c0_18 = arith.constant 0 : index
    %c3_19 = arith.constant 3 : index
    %19 = memref.load %arg2[%c0_18, %c3_19] : memref<3x4xf32, #tpu.memory_space<smem>>
    %20 = vector.broadcast %19 : f32 to vector<2x128xf32>
    %21 = arith.mulf %20, %7 : vector<2x128xf32>
    %22 = arith.addf %18, %21 : vector<2x128xf32>
    %c0_20 = arith.constant 0 : index
    %23 = memref.load %arg3[%c0_20] : memref<3xf32, #tpu.memory_space<smem>>
    %24 = vector.broadcast %23 : f32 to vector<2x128xf32>
    %25 = arith.addf %22, %24 : vector<2x128xf32>
    %c0_21 = arith.constant 0 : index
    %c0_22 = arith.constant 0 : index
    %c0_23 = arith.constant 0 : index
    %c0_24 = arith.constant 0 : index
    %26 = vector.load %arg5[%c0_21, %c0_22, %c0_23, %c0_24] : memref<1x3x2x128xf32, #tpu.memory_space<vmem>>, vector<1x1x2x128xf32>
    %27 = vector.shape_cast %26 : vector<1x1x2x128xf32> to vector<2x128xf32>
    %28 = vector.shape_cast %25 : vector<2x128xf32> to vector<1x1x2x128xf32>
    tpu.vector_store %arg5[%c0_21, %c0_22, %c0_23, %c0_24], %28 {strides = array<i32>} : memref<1x3x2x128xf32, #tpu.memory_space<vmem>>, vector<1x1x2x128xf32>,
    %c1_25 = arith.constant 1 : index
    %c0_26 = arith.constant 0 : index
    %29 = memref.load %arg2[%c1_25, %c0_26] : memref<3x4xf32, #tpu.memory_space<smem>>
    %30 = vector.broadcast %29 : f32 to vector<2x128xf32>
    %31 = arith.mulf %30, %1 : vector<2x128xf32>
    %c1_27 = arith.constant 1 : index
    %c1_28 = arith.constant 1 : index
    %32 = memref.load %arg2[%c1_27, %c1_28] : memref<3x4xf32, #tpu.memory_space<smem>>
    %33 = vector.broadcast %32 : f32 to vector<2x128xf32>
    %34 = arith.mulf %33, %3 : vector<2x128xf32>
    %35 = arith.addf %31, %34 : vector<2x128xf32>
    %c1_29 = arith.constant 1 : index
    %c2_30 = arith.constant 2 : index
    %36 = memref.load %arg2[%c1_29, %c2_30] : memref<3x4xf32, #tpu.memory_space<smem>>
    %37 = vector.broadcast %36 : f32 to vector<2x128xf32>
    %38 = arith.mulf %37, %5 : vector<2x128xf32>
    %39 = arith.addf %35, %38 : vector<2x128xf32>
    %c1_31 = arith.constant 1 : index
    %c3_32 = arith.constant 3 : index
    %40 = memref.load %arg2[%c1_31, %c3_32] : memref<3x4xf32, #tpu.memory_space<smem>>
    %41 = vector.broadcast %40 : f32 to vector<2x128xf32>
    %42 = arith.mulf %41, %7 : vector<2x128xf32>
    %43 = arith.addf %39, %42 : vector<2x128xf32>
    %c1_33 = arith.constant 1 : index
    %44 = memref.load %arg3[%c1_33] : memref<3xf32, #tpu.memory_space<smem>>
    %45 = vector.broadcast %44 : f32 to vector<2x128xf32>
    %46 = arith.addf %43, %45 : vector<2x128xf32>
    %c0_34 = arith.constant 0 : index
    %c1_35 = arith.constant 1 : index
    %c0_36 = arith.constant 0 : index
    %c0_37 = arith.constant 0 : index
    %47 = vector.load %arg5[%c0_34, %c1_35, %c0_36, %c0_37] : memref<1x3x2x128xf32, #tpu.memory_space<vmem>>, vector<1x1x2x128xf32>
    %48 = vector.shape_cast %47 : vector<1x1x2x128xf32> to vector<2x128xf32>
    %49 = vector.shape_cast %46 : vector<2x128xf32> to vector<1x1x2x128xf32>
    tpu.vector_store %arg5[%c0_34, %c1_35, %c0_36, %c0_37], %49 {strides = array<i32>} : memref<1x3x2x128xf32, #tpu.memory_space<vmem>>, vector<1x1x2x128xf32>,
    %c2_38 = arith.constant 2 : index
    %c0_39 = arith.constant 0 : index
    %50 = memref.load %arg2[%c2_38, %c0_39] : memref<3x4xf32, #tpu.memory_space<smem>>
    %51 = vector.broadcast %50 : f32 to vector<2x128xf32>
    %52 = arith.mulf %51, %1 : vector<2x128xf32>
    %c2_40 = arith.constant 2 : index
    %c1_41 = arith.constant 1 : index
    %53 = memref.load %arg2[%c2_40, %c1_41] : memref<3x4xf32, #tpu.memory_space<smem>>
    %54 = vector.broadcast %53 : f32 to vector<2x128xf32>
    %55 = arith.mulf %54, %3 : vector<2x128xf32>
    %56 = arith.addf %52, %55 : vector<2x128xf32>
    %c2_42 = arith.constant 2 : index
    %c2_43 = arith.constant 2 : index
    %57 = memref.load %arg2[%c2_42, %c2_43] : memref<3x4xf32, #tpu.memory_space<smem>>
    %58 = vector.broadcast %57 : f32 to vector<2x128xf32>
    %59 = arith.mulf %58, %5 : vector<2x128xf32>
    %60 = arith.addf %56, %59 : vector<2x128xf32>
    %c2_44 = arith.constant 2 : index
    %c3_45 = arith.constant 3 : index
    %61 = memref.load %arg2[%c2_44, %c3_45] : memref<3x4xf32, #tpu.memory_space<smem>>
    %62 = vector.broadcast %61 : f32 to vector<2x128xf32>
    %63 = arith.mulf %62, %7 : vector<2x128xf32>
    %64 = arith.addf %60, %63 : vector<2x128xf32>
    %c2_46 = arith.constant 2 : index
    %65 = memref.load %arg3[%c2_46] : memref<3xf32, #tpu.memory_space<smem>>
    %66 = vector.broadcast %65 : f32 to vector<2x128xf32>
    %67 = arith.addf %64, %66 : vector<2x128xf32>
    %c0_47 = arith.constant 0 : index
    %c2_48 = arith.constant 2 : index
    %c0_49 = arith.constant 0 : index
    %c0_50 = arith.constant 0 : index
    %68 = vector.load %arg5[%c0_47, %c2_48, %c0_49, %c0_50] : memref<1x3x2x128xf32, #tpu.memory_space<vmem>>, vector<1x1x2x128xf32>
    %69 = vector.shape_cast %68 : vector<1x1x2x128xf32> to vector<2x128xf32>
    %70 = vector.shape_cast %67 : vector<2x128xf32> to vector<1x1x2x128xf32>
    tpu.vector_store %arg5[%c0_47, %c2_48, %c0_49, %c0_50], %70 {strides = array<i32>} : memref<1x3x2x128xf32, #tpu.memory_space<vmem>>, vector<1x1x2x128xf32>,
    return
  }
  func.func @transform_0(%arg0: i32, %arg1: i32) -> (i32, i32) {
    %c0_i32 = arith.constant 0 : i32
    %c0_i32_0 = arith.constant 0 : i32
    %c0_i32_1 = arith.constant 0 : i32
    return %c0_i32, %c0_i32_0 : i32, i32
  }
  func.func @transform_1(%arg0: i32, %arg1: i32) -> i32 {
    %c0_i32 = arith.constant 0 : i32
    %c0_i32_0 = arith.constant 0 : i32
    return %c0_i32 : i32
  }
  func.func @transform_2(%arg0: i32, %arg1: i32) -> (i32, i32, i32, i32) {
    %c0_i32 = arith.constant 0 : i32
    %c0_i32_0 = arith.constant 0 : i32
    %c0_i32_1 = arith.constant 0 : i32
    return %arg0, %c0_i32, %arg1, %c0_i32_0 : i32, i32, i32, i32
  }
  func.func @transform_3(%arg0: i32, %arg1: i32) -> (i32, i32, i32, i32) {
    %c0_i32 = arith.constant 0 : i32
    %c0_i32_0 = arith.constant 0 : i32
    %c0_i32_1 = arith.constant 0 : i32
    return %arg0, %c0_i32, %arg1, %c0_i32_0 : i32, i32, i32, i32
  }
}

</mosaic_0001>

<bundles_post_ra>
// kernel: tpu_custom_call.1
= control target key start
LH: loop header
LB: loop body
LE: loop exit
PB: predicated region body
PF: predicated region fallthrough
CT: control target
= control target key end

     0   :  { %s904_s0 = inlined_call_operand.hbm [shape: f32[3,4], index: 0, kind: input, shape index: {}]   ;;  %s905_s1 = inlined_call_operand.vmem [shape: f32[3], index: 1, kind: input, shape index: {}]   ;;  %s906_s2 = inlined_call_operand.hbm [shape: f32[2,4,2,128], index: 2, kind: input, shape index: {}]   ;;  %s907_s3 = inlined_call_operand.hbm [shape: f32[2,3,2,128], index: 3, kind: output, shape index: {}]  }
   0x1   :  { %909 = sst [smem:[#allocation14_spill]] %s904_s0 }
   0x2   :  { %8 = vsyncpa [#allocation5], 0 }
   0x3   :  { %9 = vsyncpa [#allocation6], 0 }
   0x4   :  { %10 = vsyncpa [#allocation3], 0 }
   0x5   :  { %12 = vsyncpa [#allocation3 + $0x1], 0 }
   0x6   :  { %13 = vsyncpa [#allocation4], 0 }
   0x7   :  { %15 = vsyncpa [#allocation4 + $0x1], 0  ;;  %s717_s12 = smov 0   ;;  %s719_s13 = smov 0  }
   0x8   :  { %s721_s14 = smov 0   ;;  %s723_s15 = smov 0  }
   0x9   :  { %s725_s16 = smov 0   ;;  %s727_s17 = smov 0  }
   0xa LB: > { %s421_s18 = sadd.s32 4294967295, %s687_s17   ;;  %s422_s19 = sadd.s32 4294967294, %s687_s17   ;;  %s687_s17 = sphi %s727_s17, %s21_s17   ;;  %s683_s16 = sphi %s725_s16, %s925_s16   ;;  %s679_s15 = sphi %s723_s15, %s924_s15   ;;  %s675_s14 = sphi %s721_s14, %s923_s14   ;;  %s671_s13 = sphi %s719_s13, %s922_s13   ;;  %s667_s12 = sphi %s717_s12, %s921_s12  }
   0xb   : > { %s84_s20 = sadd.s32 1, %s675_s14  ;;  %p91_p0 = scmp.ne.s32.totalorder %s675_s14, %s671_s13 }
   0xc   : > { %p92_p1 = scmp.eq.s32.totalorder %s687_s17, 0  ;;  %p97_p2 = scmp.ne.s32.totalorder %s671_s13, %s667_s12 }
   0xd   : > { %p755_p3 = scmp.eq.s32.totalorder %s421_s18, 0  ;;  %p123_p4 = scmp.eq.s32.totalorder %s421_s18, 1 }
   0xe   : > { %p93_p5 = por %p92_p1, %p91_p0  ;;  %p129_p6 = scmp.eq.s32.totalorder %s422_s19, 1 }
   0xf   : > { %p761_p7 = por %p755_p3, %p97_p2  ;;  %p765_p8 = por %p123_p4, %p91_p0 }
  0x10   : > { %p769_p9 = por %p129_p6, %p97_p2  ;;  %p423_p10 = scmp.ge.s32.totalorder %s687_s17, 1 }
  0x11   : > { %s912_s23 = scalar_select %p765_p8, 1, 0 }
  0x12   : > { %s913_s24 = scalar_select %p769_p9, 1, 0 }
  0x13   : > { %p136_p11 = scmp.lt.s32.totalorder %s687_s17, 3  ;;  %p487_p1 = scmp.lt.s32.totalorder %s687_s17, 2 }
  0x14   : > { %s158_s28 = sshll.u32 %s905_s1, 4  ;;  %s169_s4 = sand.u32 1, %s675_s14   ;;  %s159_s28 = int_to_ptr.vmem [resolvable:$true] %s158_s28 }
  0x15   : > { %p776_p13 = pnand %p423_p10, %p136_p11  ;;  %p786_p4 = pnand %p487_p1, %p93_p5 }
  0x16   : > { %s33_s5 = sadd.s32 1, %s683_s16  ;;  %s689_s6 = smov [#allocation2]  }
  0x17   : > { %p470_p0 = pneg %p776_p13  ;;  %s917_s0 = sld [smem:[#allocation14_spill]] }
  0x18   : > { %s556_s9 = scalar_lea.vmem %s159_s28, 16  ;;  %p564_p1 = scmp.lt.s32.totalorder %s159_s28, %s159_s28 }
  0x19   : > { %p792_p2 = pnand %p470_p0, %p755_p3  ;;  %p557_p5 = scmp.ne.s32.totalorder %s159_s28, %s556_s9 }
  0x1a   : > { %p565_p0 = scmp.lt.s32.totalorder %s556_s9, %s556_s9 }
  0x1b   : > { %p558_p6 = pneg %p792_p2 }
  0x1c   : > { %p566_p12 = por %p565_p0, %p564_p1 }
  0x1d   : > { %473 = dma.hbm_to_smem (!%p792_p2), %s917_s0, 64, %s689_s6, [#allocation5]  }
  0x1e   : > { %p559_p10 = pnand %p558_p6, %p557_p5 }
  0x20   : > { %p560_p11 = pneg %p559_p10 }
  0x22   : > { %p567_p9 = pnand %p566_p12, %p560_p11 }
  0x24   : > { %570 = shalt.err (!%p567_p9)
}
  0x25   : > { %s690_s10 = smov [#allocation7]   ;;  %p35_p8 = scmp.ge.s32.totalorder %s33_s5, 2 }
  0x26   : > { %476 = dma.vmem_to_smem (!%p792_p2), %s159_s28, 16, %s690_s10, [#allocation6]  }
  0x27   : > { %s427_s11 = sshll.u32 %s169_s4, 3  ;;  %s455_s18 = sshll.u32 %s683_s16, 7 }
  0x28   : > { %s927_s5 = smov (%p35_p8, %s33_s5), 0  ;;  %s180_s27 = scalar_lea.hbm %s906_s2, %s455_s18 }
  0x29   : > { %s79_s6 = ssub.s32 %s683_s16, %s927_s5  ;;  %s173_s7 = scalar_lea.vmem [#allocation8], %s427_s11 }
  0x2a   : > { %s181_s8 = sshll.u32 %s173_s7, 4  ;;  %p82_p9 = scmp.eq.s32.totalorder %s79_s6, 0  ;;  %s182_s8 = int_to_ptr.vmem [resolvable:$true] %s181_s8 }
  0x2b   : > { %s170_s9 = scalar_lea.sflag [#allocation3], %s169_s4  ;;  %p573_p12 = pneg %p786_p4 }
  0x2c   : > { %s818_s30 = scalar_select %p82_p9, %s675_s14, %s84_s20  }
  0x2d   : > { %s584_s28 = scalar_lea.vmem %s182_s8, 128  ;;  %s691_s10 = smov [#allocation8]  }
  0x2e   : > { %p585_p2 = scmp.ne.s32.totalorder %s182_s8, %s584_s28  ;;  %s589_s0 = sshll.u32 %s691_s10, 4  ;;  %s590_s0 = int_to_ptr.vmem [resolvable:$false] %s589_s0 }
  0x2f   : > { %s591_s19 = scalar_lea.vmem %s590_s0, 256  ;;  %p592_p6 = scmp.lt.s32.totalorder %s182_s8, %s590_s0 }
  0x30   : > { %p587_p8 = pnand %p585_p2, %p573_p12  ;;  %p593_p10 = scmp.lt.s32.totalorder %s591_s19, %s584_s28 }
  0x32   : > { %p588_p5 = pneg %p587_p8  ;;  %p594_p11 = por %p593_p10, %p592_p6 }
  0x34   : > { %p595_p1 = pnand %p594_p11, %p588_p5 }
  0x36   : > { %598 = shalt.err (!%p595_p1)
}
  0x37   : > { %s692_s11 = smov 32   ;;  %s693_s20 = smov 2  }
  0x38   : > { %480 = dma.hbm_to_vmem [thread:$0]  (!%p786_p4), %s180_s27, 128, %s182_s8, %s170_s9, %s692_s11, %s692_s11, %s693_s20  }
  0x39   : > { %193 = sbr.rel (%p776_p13) target bundleno = 113 (0x71), region = 32 }
  0x3e   : > { %650 = dma.done.wait (%p755_p3), [#allocation5], 64  }
  0x3f   : > { %652 = vsyncadd (%p755_p3), [#allocation5], 4294967232 }
  0x40   : > { %654 = dma.done.wait (%p755_p3), [#allocation6], 16  }
  0x41   : > { %656 = vsyncadd (%p755_p3), [#allocation6], 4294967280  ;;  %s835_s0 = sand.u32 1, %s671_s13  }
  0x42   : > { %s433_s25 = sshll.u32 %s835_s0, 3  ;;  %s204_s29 = scalar_lea.sflag [#allocation3], %s835_s0 }
  0x43   : > { %s207_s4 = scalar_lea.vmem [#allocation8], %s433_s25 }
  0x44   : > { %658 = dma.done.wait (%p761_p7), %s204_s29, 128  }
  0x45   : > { %660 = vsyncadd (%p761_p7), %s204_s29, 4294967168 }
  0x46   : > { %212 = sfence }
  0x47   : > { %s238_s18 = sld [smem:[#allocation2]]  ;;  %v231_v0 = vld [vmem:[%s207_s4] sm:$0x3]  ;;  %v434_v1 = vld [vmem:[%s207_s4 + $0x2] sm:$0x3]  ;;  %s456_s19 = smul.u32 6, %s835_s0 }
  0x48   : > { %s437_s26 = sld [smem:[#allocation2 + $0x1]]  ;;  %v435_v2 = vld [vmem:[%s207_s4 + $0x4] sm:$0x3]  ;;  %v436_v4 = vld [vmem:[%s207_s4 + $0x6] sm:$0x3]  ;;  %p918_p7 = scmp.ne.s32.totalorder %s912_s23, 0 }
  0x49   : > { %s438_s27 = sld [smem:[#allocation2 + $0x2]]  ;;  %s230_s4 = scalar_lea.vmem [#allocation9], %s456_s19 }
  0x4a   : > { %s439_s21 = sld [smem:[#allocation2 + $0x3]] }
  0x4b   : > { %s843_s6 = sld [smem:[#allocation7]] }
  0x4c   : > { %s440_s7 = sld [smem:[#allocation2 + $0x80]] }
  0x4d   : > { %v239_v3 = vstv %s238_s18  ;;  %s441_s8 = sld [smem:[#allocation2 + $0x81]]  ;;  %s312_s18 = sshll.u32 %s230_s4, 4  ;;  %s851_s18 = int_to_ptr.vmem [resolvable:$true] %s312_s18 }
  0x4e   : > { %v240_v5 = vmul.f32 %v239_v3, %v231_v0  ;;  %v242_v6 = vstv %s437_s26  ;;  %s442_s9 = sld [smem:[#allocation2 + $0x82]]  ;;  %s457_s26 = smul.u32 96, %s679_s15 }
  0x4f   : > { %v243_v7 = vmul.f32 %v434_v1, %v242_v6  ;;  %v246_v8 = vstv %s438_s27  ;;  %s443_s22 = sld [smem:[#allocation2 + $0x83]]  ;;  %s694_s15 = smov [#allocation9]  }
  0x50   : > { %v247_v9 = vmul.f32 %v435_v2, %v246_v8  ;;  %v250_v10 = vstv %s439_s21  ;;  %s845_s28 = sld [smem:[#allocation7 + $0x1]] }
  0x51   : > { %v244_v11 = vadd.f32 %v243_v7, %v240_v5  ;;  %v251_v12 = vmul.f32 %v436_v4, %v250_v10  ;;  %s446_s10 = sld [smem:[#allocation2 + $0x100]]  ;;  %v254_v17 = vstv %s843_s6  ;;  %s856_s6 = scalar_lea.hbm %s907_s3, %s457_s26 }
  0x52   : > { %v258_v13 = vstv %s440_s7  ;;  %s447_s11 = sld [smem:[#allocation2 + $0x101]]  ;;  %s298_s7 = scalar_lea.sflag [#allocation4], %s835_s0 }
  0x53   : > { %v248_v14 = vadd.f32 %v247_v9, %v244_v11  ;;  %v259_v15 = vmul.f32 %v258_v13, %v231_v0  ;;  %v261_v16 = vstv %s441_s8  ;;  %s448_s20 = sld [smem:[#allocation2 + $0x102]]  ;;  %s599_s8 = scalar_lea.vmem %s851_s18, 96 }
  0x54   : > { %v262_v18 = vmul.f32 %v434_v1, %v261_v16  ;;  %v265_v19 = vstv %s442_s9  ;;  %s449_s25 = sld [smem:[#allocation2 + $0x103]]  ;;  %p600_p3 = scmp.ne.s32.totalorder %s851_s18, %s599_s8 }
  0x55   : > { %v252_v20 = vadd.f32 %v251_v12, %v248_v14  ;;  %v266_v21 = vmul.f32 %v435_v2, %v265_v19  ;;  %v269_v22 = vstv %s443_s22  ;;  %s450_s29 = sld [smem:[#allocation7 + $0x2]]  ;;  %s603_s9 = sshll.u32 %s694_s15, 4  ;;  %s604_s9 = int_to_ptr.vmem [resolvable:$false] %s603_s9 }
  0x56   : > { %v263_v23 = vadd.f32 %v262_v18, %v259_v15  ;;  %v270_v24 = vmul.f32 %v436_v4, %v269_v22  ;;  %v273_v30 = vstv %s845_s28  ;;  %p601_p13 = pnand %p600_p3, %p918_p7  ;;  %s605_s22 = scalar_lea.vmem %s604_s9, 192 }
  0x57   : > { %v255_v25 = vadd.f32 %v254_v17, %v252_v20  ;;  %v278_v26 = vstv %s446_s10  ;;  %p606_p0 = scmp.lt.s32.totalorder %s851_s18, %s604_s9  ;;  %p607_p9 = scmp.lt.s32.totalorder %s605_s22, %s599_s8 }
  0x58   : > { %v267_v27 = vadd.f32 %v266_v21, %v263_v23  ;;  %v279_v28 = vmul.f32 %v278_v26, %v231_v0  ;;  %v281_v29 = vstv %s447_s11  ;;  %p602_p4 = pneg %p601_p13 }
  0x59   : > { %256 = vst [vmem:[%s230_s4] sm:$0x3] %v255_v25  ;;  %v282_v31 = vmul.f32 %v434_v1, %v281_v29  ;;  %v285_v32 = vstv %s448_s20  ;;  %p608_p12 = por %p607_p9, %p606_p0 }
  0x5a   : > { %v271_v33 = vadd.f32 %v270_v24, %v267_v27  ;;  %v286_v34 = vmul.f32 %v435_v2, %v285_v32  ;;  %v289_v35 = vstv %s449_s25 }
  0x5b   : > { %v283_v36 = vadd.f32 %v282_v31, %v279_v28  ;;  %v290_v37 = vmul.f32 %v436_v4, %v289_v35  ;;  %v293_v40 = vstv %s450_s29  ;;  %p609_p2 = pnand %p608_p12, %p602_p4 }
  0x5c   : > { %v274_v38 = vadd.f32 %v273_v30, %v271_v33 }
  0x5d   : > { %v287_v39 = vadd.f32 %v286_v34, %v283_v36 }
  0x5e   : > { %445 = vst [vmem:[%s230_s4 + $0x2] sm:$0x3] %v274_v38 }
  0x5f   : > { %v291_v41 = vadd.f32 %v290_v37, %v287_v39 }
  0x61   : > { %v294_v42 = vadd.f32 %v293_v40, %v291_v41 }
  0x63   : > { %451 = vst [vmem:[%s230_s4 + $0x4] sm:$0x3] %v294_v42 }
  0x64   : > { %612 = shalt.err (!%p609_p2)
}
  0x65   : > { %s613_s28 = scalar_lea.hbm %s856_s6, 96  ;;  %s617_s11 = scalar_lea.hbm %s907_s3, 192 }
  0x66   : > { %p614_p8 = scmp.ne.s32.totalorder %s856_s6, %s613_s28  ;;  %p618_p10 = scmp.lt.s32.totalorder %s856_s6, %s907_s3 }
  0x67   : > { %p619_p11 = scmp.lt.s32.totalorder %s617_s11, %s613_s28 }
  0x68   : > { %p615_p5 = pnand %p614_p8, %p918_p7 }
  0x69   : > { %p620_p1 = por %p619_p11, %p618_p10 }
  0x6a   : > { %p616_p6 = pneg %p615_p5 }
  0x6c   : > { %p621_p3 = pnand %p620_p1, %p616_p6 }
  0x6e   : > { %624 = shalt.err (!%p621_p3)
}
  0x6f   : > { %s695_s29 = smov 32   ;;  %s696_s4 = smov 2  }
  0x70   : > { %468 = dma.vmem_to_hbm [thread:$0]  (%p918_p7), %s851_s18, 96, %s856_s6, %s298_s7, %s695_s29, %s695_s29, %s696_s4  }
  0x71 PF: > { %s327_s26 = sand.u32 1, %s667_s12   ;;  %p919_p13 = scmp.ne.s32.totalorder %s913_s24, 0 }
  0x72   : > { %p920_p4 = scmp.ge.s32.totalorder %s687_s17, 2  ;;  %s328_s27 = scalar_lea.sflag [#allocation4], %s327_s26 }
  0x74   : > { %p482_p0 = pnand %p920_p4, %p919_p13 }
  0x76   : > { %p483_p9 = pneg %p482_p0 }
  0x78   : > { %662 = dma.done.wait (%p483_p9), %s328_s27, 96  }
  0x79   : > { %664 = vsyncadd (%p483_p9), %s328_s27, 4294967200  ;;  %s21_s17 = sadd.s32 1, %s687_s17   ;;  %s921_s12 = smov %s671_s13 }
  0x7a   : > { %p18_p12 = scmp.ge.s32.totalorder %s21_s17, 4   ;;  %s922_s13 = smov %s675_s14 }
  0x7b   : > { %s923_s14 = smov %s818_s30  ;;  %s924_s15 = smov %s683_s16 }
  0x7c   : > { %s925_s16 = smov %s927_s5  ;;  %20 = sbr.rel (!%p18_p12) target bundleno = 10 (0xa), region = 92 }
  0x81   :  { %333 = vsyncpa [#allocation3], 1 }
  0x82   :  { %335 = vsyncpa [#allocation3 + $0x1], 1 }
  0x83   :  { %336 = vsyncpa [#allocation4], 1 }
  0x84   :  { %338 = vsyncpa [#allocation4 + $0x1], 1 }
  0x85   :  { %339 = vsyncpa [#allocation5], 1 }
  0x86   :  { %341 = vsyncpa [#allocation5 + $0x1], 1 }
  0x87   :  { %342 = vsyncpa [#allocation6], 1 }
  0x88   :  { %344 = vsyncpa [#allocation6 + $0x1], 1 }

</bundles_post_ra>
